<compile_context>
chip_gen: v7x
topology: tpu7x:2x2x1
jax: 0.10.0
libtpu: 0.0.40
codegen_flags: <defaults>
</compile_context>

<pallas_src>
import jax
import jax.numpy as jnp
from jax.experimental import pallas as pl
from jax.experimental.pallas import tpu as pltpu

# Layer sizes of the autoencoder (encoder then decoder).
SIZES = [36, 18, 9, 5, 2, 5, 9, 18, 36]
N_LAYERS = len(SIZES) - 1  # 8 linear layers


def _round_up(n, m):
    return ((n + m - 1) // m) * m


# --- packed parameter buffer layout -----------------------------------------
# Layer li's weight W (out, in) -- PyTorch orientation -- lives at rows
#   [W_ROW_OFFSETS[li] : W_ROW_OFFSETS[li] + out), cols [0 : in)
# (row blocks padded to multiples of 8 sublanes). Its bias lives in the same
# rows at the single column BIAS_COL (as a (out, 1) column, ready for lane
# broadcast in the batch-on-lanes layout).
W_ROW_OFFSETS = []
_off = 0
for _li in range(N_LAYERS):
    W_ROW_OFFSETS.append(_off)
    _off += _round_up(SIZES[_li + 1], 8)
TOTAL_ROWS = _round_up(_off, 8)   # 144
PARAM_COLS = 128
BIAS_COL = 64                     # > max(in)=36, so it never overlaps a weight


def _dae_kernel(x_ref, p_ref, out_ref):
    """Runs the full encoder+decoder stack on one batch tile.

    x_ref:   (tile_b, 36)  f32  (batch on sublanes)
    p_ref:   (144, 128)    f32  packed weights+biases (resident, constant block)
    out_ref: (tile_b, 36)  f32
    """
    # Batch-on-lanes: one XLU transpose in, one out. Intermediate activations
    # are (fout, tile_b), i.e. lane-dense, so per-layer MXU/VPU work scales
    # with ceil(fout/8) * tile_b/128 vregs instead of tile_b/8 mostly-empty
    # ones, and the final store is unmasked along lanes.
    h = jnp.transpose(x_ref[...])                          # (36, tile_b)
    tile_b = h.shape[1]
    for li in range(N_LAYERS):
        fin, fout = SIZES[li], SIZES[li + 1]
        r = W_ROW_OFFSETS[li]
        w = p_ref[r:r + fout, 0:fin]                       # (out, in)
        b = p_ref[r:r + fout, BIAS_COL:BIAS_COL + 1]       # (out, 1)
        if fin <= 8:
            # Tiny contraction (5->2, 2->5): a few VPU broadcast FMAs keep
            # this off the strictly serial MXU push/pop path.
            acc = w[:, 0:1] * h[0:1, :] + b                # (out, tile_b)
            for k in range(1, fin):
                acc = acc + w[:, k:k + 1] * h[k:k + 1, :]
            h = acc
        else:
            h = jnp.dot(w, h, preferred_element_type=jnp.float32) + b
        if li != N_LAYERS - 1:
            h = jnp.maximum(h, 0.0)
    out_ref[...] = jnp.transpose(h).astype(out_ref.dtype)  # (tile_b, 36)


def pack_params(params):
    """Pack list of (W, b) with W: (out, in) (PyTorch layout), b: (out,)."""
    buf = jnp.zeros((TOTAL_ROWS, PARAM_COLS), jnp.float32)
    for li, (w, b) in enumerate(params):
        fin, fout = SIZES[li], SIZES[li + 1]
        r = W_ROW_OFFSETS[li]
        buf = buf.at[r:r + fout, 0:fin].set(w.astype(jnp.float32))
        buf = buf.at[r:r + fout, BIAS_COL].set(jnp.reshape(b, (-1,)).astype(jnp.float32))
    return buf


def denoising_model_forward(x, packed_params, *, tile_b=4096, min_grid=2):
    """x: (B, 36) float32. packed_params: (144, 128) from pack_params()."""
    B, F = x.shape
    assert F == SIZES[0]
    assert x.dtype == jnp.float32, "kernel computes in f32 (v5e has no bf16 VPU)"

    # Tile clamp: multiple of 8 (sublane constraint), no larger than the
    # 8-rounded batch, capped at 8192 so the 4 lane-padded pipeline buffers
    # (in+out, double-buffered, each stored as tile_b x 128 words) stay
    # <= 16 MiB of VMEM.
    b_ceil = _round_up(B, 8)
    tile_b = max(8, min(_round_up(tile_b, 8), 8192, b_ceil))
    # v7x megacore: keep the grid >= min_grid steps (the batch axis is
    # "parallel") whenever each resulting tile still has >= 256 rows to
    # amortize the ~0.35us per-step pipeline overhead. No-op for tiny B.
    if min_grid > 1 and b_ceil >= min_grid * 256:
        tile_b = min(tile_b, _round_up(pl.cdiv(b_ceil, min_grid), 8))
    grid = pl.cdiv(B, tile_b)

    # Explicit (lane-padded) VMEM accounting -> vmem_limit_bytes.
    pipeline_bytes = 4 * tile_b * 128 * 4                    # in+out, 2x buffered
    param_bytes = 2 * TOTAL_ROWS * PARAM_COLS * 4            # packed params, 2x
    scratch_bytes = 8 * _round_up(F, 8) * tile_b * 4         # transposed acts / XLU scratch
    vmem_limit = int(min(48 << 20,
                         max(32 << 20,
                             pipeline_bytes + param_bytes + scratch_bytes + (4 << 20))))

    # No wrapper-side padding / slicing: the last block may be ragged; OOB
    # rows compute garbage independently of real rows and their writes are
    # dropped, so this saves a full extra HBM pad/slice round trip.
    return pl.pallas_call(
        _dae_kernel,
        out_shape=jax.ShapeDtypeStruct((B, SIZES[-1]), x.dtype),
        grid_spec=pltpu.PrefetchScalarGridSpec(
            num_scalar_prefetch=0,
            grid=(grid,),
            in_specs=[
                # Input: tile over batch only; 36 == full feature dim.
                pl.BlockSpec((tile_b, F), lambda i: (i, 0)),
                # Packed params: single full-array block, constant index_map
                # (resident across the whole grid).
                pl.BlockSpec((TOTAL_ROWS, PARAM_COLS), lambda i: (0, 0)),
            ],
            out_specs=pl.BlockSpec((tile_b, SIZES[-1]), lambda i: (i, 0)),
        ),
        compiler_params=pltpu.CompilerParams(
            dimension_semantics=("parallel",),
            vmem_limit_bytes=vmem_limit,
        ),
    )(x, packed_params)


def init_params(key):
    """Deterministic init mimicking nn.Linear default (uniform +/- 1/sqrt(in)).

    Returns list of (W, b) with W of shape (out_features, in_features), i.e.
    the same orientation as PyTorch's weight, and b of shape (out_features,).
    """
    params = []
    for li in range(N_LAYERS):
        fin, fout = SIZES[li], SIZES[li + 1]
        key, kw, kb = jax.random.split(key, 3)
        bound = 1.0 / (fin ** 0.5)
        w = jax.random.uniform(kw, (fout, fin), jnp.float32, -bound, bound)
        b = jax.random.uniform(kb, (fout,), jnp.float32, -bound, bound)
        params.append((w, b))
    return params


def reference_forward(x, params):
    """Pure-JAX reference for correctness checking (exact f32 dots)."""
    h = x
    for li, (w, b) in enumerate(params):
        h = jnp.dot(h, w.T, precision=jax.lax.Precision.HIGHEST) + jnp.reshape(b, (1, -1))
        if li != N_LAYERS - 1:
            h = jnp.maximum(h, 0.0)
    return h


if __name__ == "__main__":
    key = jax.random.PRNGKey(0)
    kx, kp = jax.random.split(key)

    params = init_params(kp)
    packed = pack_params(params)

    # Ragged single-tile batch: exercises the non-divisible (OOB-masked) block path.
    B1 = 37
    x1 = jax.random.normal(kx, (B1, 36), jnp.float32)
    out1 = jax.block_until_ready(denoising_model_forward(x1, packed))
    ref1 = reference_forward(x1, params)
    assert out1.shape == (B1, 36)
    assert jnp.allclose(out1, ref1, atol=1e-4, rtol=1e-4), "mismatch vs reference (B=37)"

    # Multi-step grid with a ragged last tile: exercises the parallel batch axis
    # (megacore path on v7x) plus OOB-masked stores on the final block.
    B2 = 600
    x2 = jax.random.normal(jax.random.fold_in(kx, 1), (B2, 36), jnp.float32)
    out2 = jax.block_until_ready(denoising_model_forward(x2, packed, tile_b=256))
    ref2 = reference_forward(x2, params)
    assert out2.shape == (B2, 36)
    assert jnp.allclose(out2, ref2, atol=1e-4, rtol=1e-4), "mismatch vs reference (B=600)"

    print("KERNEL_OK")
</pallas_src>

<mosaic_0001>
module attributes {stable_mosaic.version = 11 : i64} {
  func.func @_dae_kernel(%arg0: i32, %arg1: memref<40x36xf32, #tpu.memory_space<vmem>>, %arg2: memref<144x128xf32, #tpu.memory_space<vmem>>, %arg3: memref<40x36xf32, #tpu.memory_space<vmem>>) attributes {dimension_semantics = [#tpu.dimension_semantics<parallel>], iteration_bounds = array<i64: 1>, scalar_prefetch = 0 : i64, scratch_operands = 0 : i64, tpu.core_type = #tpu.core_type<tc>, window_params = [{transform_indices = @transform_0, window_bounds = array<i64: 40, 36>}, {pipeline_mode = #tpu.pipeline_mode<synchronous>, transform_indices = @transform_1, window_bounds = array<i64: 144, 128>}, {transform_indices = @transform_2, window_bounds = array<i64: 40, 36>}]} {
    %c0 = arith.constant 0 : index
    %c0_0 = arith.constant 0 : index
    %0 = vector.load %arg1[%c0, %c0_0] : memref<40x36xf32, #tpu.memory_space<vmem>>, vector<40x36xf32>
    %1 = tpu.transpose %0, [1, 0] : vector<40x36xf32> -> vector<36x40xf32>
    %c0_1 = arith.constant 0 : index
    %c0_2 = arith.constant 0 : index
    %2 = vector.load %arg2[%c0_1, %c0_2] : memref<144x128xf32, #tpu.memory_space<vmem>>, vector<18x36xf32>
    %c0_3 = arith.constant 0 : index
    %c64 = arith.constant 64 : index
    %3 = vector.load %arg2[%c0_3, %c64] : memref<144x128xf32, #tpu.memory_space<vmem>>, vector<18x1xf32>
    %cst = arith.constant dense<0.000000e+00> : vector<18x40xf32>
    %4 = tpu.matmul %2, %1, %cst {dimension_numbers = #tpu.dot_dimension_numbers<[1], [0], [0], [1], [0, 0, 1, 1], [], []>} : vector<18x36xf32>, vector<36x40xf32>, vector<18x40xf32> -> vector<18x40xf32>
    %5 = vector.broadcast %3 : vector<18x1xf32> to vector<18x40xf32>
    %6 = arith.addf %4, %5 : vector<18x40xf32>
    %cst_4 = arith.constant 0.000000e+00 : f32
    %7 = vector.broadcast %cst_4 : f32 to vector<18x40xf32>
    %8 = arith.maximumf %6, %7 : vector<18x40xf32>
    %c24 = arith.constant 24 : index
    %c0_5 = arith.constant 0 : index
    %9 = vector.load %arg2[%c24, %c0_5] : memref<144x128xf32, #tpu.memory_space<vmem>>, vector<9x18xf32>
    %c24_6 = arith.constant 24 : index
    %c64_7 = arith.constant 64 : index
    %10 = vector.load %arg2[%c24_6, %c64_7] : memref<144x128xf32, #tpu.memory_space<vmem>>, vector<9x1xf32>
    %cst_8 = arith.constant dense<0.000000e+00> : vector<9x40xf32>
    %11 = tpu.matmul %9, %8, %cst_8 {dimension_numbers = #tpu.dot_dimension_numbers<[1], [0], [0], [1], [0, 0, 1, 1], [], []>} : vector<9x18xf32>, vector<18x40xf32>, vector<9x40xf32> -> vector<9x40xf32>
    %12 = vector.broadcast %10 : vector<9x1xf32> to vector<9x40xf32>
    %13 = arith.addf %11, %12 : vector<9x40xf32>
    %cst_9 = arith.constant 0.000000e+00 : f32
    %14 = vector.broadcast %cst_9 : f32 to vector<9x40xf32>
    %15 = arith.maximumf %13, %14 : vector<9x40xf32>
    %c40 = arith.constant 40 : index
    %c0_10 = arith.constant 0 : index
    %16 = vector.load %arg2[%c40, %c0_10] : memref<144x128xf32, #tpu.memory_space<vmem>>, vector<5x9xf32>
    %c40_11 = arith.constant 40 : index
    %c64_12 = arith.constant 64 : index
    %17 = vector.load %arg2[%c40_11, %c64_12] : memref<144x128xf32, #tpu.memory_space<vmem>>, vector<5x1xf32>
    %cst_13 = arith.constant dense<0.000000e+00> : vector<5x40xf32>
    %18 = tpu.matmul %16, %15, %cst_13 {dimension_numbers = #tpu.dot_dimension_numbers<[1], [0], [0], [1], [0, 0, 1, 1], [], []>} : vector<5x9xf32>, vector<9x40xf32>, vector<5x40xf32> -> vector<5x40xf32>
    %19 = vector.broadcast %17 : vector<5x1xf32> to vector<5x40xf32>
    %20 = arith.addf %18, %19 : vector<5x40xf32>
    %cst_14 = arith.constant 0.000000e+00 : f32
    %21 = vector.broadcast %cst_14 : f32 to vector<5x40xf32>
    %22 = arith.maximumf %20, %21 : vector<5x40xf32>
    %c48 = arith.constant 48 : index
    %c0_15 = arith.constant 0 : index
    %23 = vector.load %arg2[%c48, %c0_15] : memref<144x128xf32, #tpu.memory_space<vmem>>, vector<2x5xf32>
    %c48_16 = arith.constant 48 : index
    %c64_17 = arith.constant 64 : index
    %24 = vector.load %arg2[%c48_16, %c64_17] : memref<144x128xf32, #tpu.memory_space<vmem>>, vector<2x1xf32>
    %25 = vector.extract_strided_slice %23 {offsets = [0, 0], sizes = [2, 1], strides = [1, 1]} : vector<2x5xf32> to vector<2x1xf32>
    %26 = vector.extract_strided_slice %22 {offsets = [0, 0], sizes = [1, 40], strides = [1, 1]} : vector<5x40xf32> to vector<1x40xf32>
    %27 = vector.broadcast %25 : vector<2x1xf32> to vector<2x40xf32>
    %28 = vector.broadcast %26 : vector<1x40xf32> to vector<2x40xf32>
    %29 = arith.mulf %27, %28 : vector<2x40xf32>
    %30 = vector.broadcast %24 : vector<2x1xf32> to vector<2x40xf32>
    %31 = arith.addf %29, %30 : vector<2x40xf32>
    %32 = vector.extract_strided_slice %23 {offsets = [0, 1], sizes = [2, 1], strides = [1, 1]} : vector<2x5xf32> to vector<2x1xf32>
    %33 = vector.extract_strided_slice %22 {offsets = [1, 0], sizes = [1, 40], strides = [1, 1]} : vector<5x40xf32> to vector<1x40xf32>
    %34 = vector.broadcast %32 : vector<2x1xf32> to vector<2x40xf32>
    %35 = vector.broadcast %33 : vector<1x40xf32> to vector<2x40xf32>
    %36 = arith.mulf %34, %35 : vector<2x40xf32>
    %37 = arith.addf %31, %36 : vector<2x40xf32>
    %38 = vector.extract_strided_slice %23 {offsets = [0, 2], sizes = [2, 1], strides = [1, 1]} : vector<2x5xf32> to vector<2x1xf32>
    %39 = vector.extract_strided_slice %22 {offsets = [2, 0], sizes = [1, 40], strides = [1, 1]} : vector<5x40xf32> to vector<1x40xf32>
    %40 = vector.broadcast %38 : vector<2x1xf32> to vector<2x40xf32>
    %41 = vector.broadcast %39 : vector<1x40xf32> to vector<2x40xf32>
    %42 = arith.mulf %40, %41 : vector<2x40xf32>
    %43 = arith.addf %37, %42 : vector<2x40xf32>
    %44 = vector.extract_strided_slice %23 {offsets = [0, 3], sizes = [2, 1], strides = [1, 1]} : vector<2x5xf32> to vector<2x1xf32>
    %45 = vector.extract_strided_slice %22 {offsets = [3, 0], sizes = [1, 40], strides = [1, 1]} : vector<5x40xf32> to vector<1x40xf32>
    %46 = vector.broadcast %44 : vector<2x1xf32> to vector<2x40xf32>
    %47 = vector.broadcast %45 : vector<1x40xf32> to vector<2x40xf32>
    %48 = arith.mulf %46, %47 : vector<2x40xf32>
    %49 = arith.addf %43, %48 : vector<2x40xf32>
    %50 = vector.extract_strided_slice %23 {offsets = [0, 4], sizes = [2, 1], strides = [1, 1]} : vector<2x5xf32> to vector<2x1xf32>
    %51 = vector.extract_strided_slice %22 {offsets = [4, 0], sizes = [1, 40], strides = [1, 1]} : vector<5x40xf32> to vector<1x40xf32>
    %52 = vector.broadcast %50 : vector<2x1xf32> to vector<2x40xf32>
    %53 = vector.broadcast %51 : vector<1x40xf32> to vector<2x40xf32>
    %54 = arith.mulf %52, %53 : vector<2x40xf32>
    %55 = arith.addf %49, %54 : vector<2x40xf32>
    %cst_18 = arith.constant 0.000000e+00 : f32
    %56 = vector.broadcast %cst_18 : f32 to vector<2x40xf32>
    %57 = arith.maximumf %55, %56 : vector<2x40xf32>
    %c56 = arith.constant 56 : index
    %c0_19 = arith.constant 0 : index
    %58 = vector.load %arg2[%c56, %c0_19] : memref<144x128xf32, #tpu.memory_space<vmem>>, vector<5x2xf32>
    %c56_20 = arith.constant 56 : index
    %c64_21 = arith.constant 64 : index
    %59 = vector.load %arg2[%c56_20, %c64_21] : memref<144x128xf32, #tpu.memory_space<vmem>>, vector<5x1xf32>
    %60 = vector.extract_strided_slice %58 {offsets = [0, 0], sizes = [5, 1], strides = [1, 1]} : vector<5x2xf32> to vector<5x1xf32>
    %61 = vector.extract_strided_slice %57 {offsets = [0, 0], sizes = [1, 40], strides = [1, 1]} : vector<2x40xf32> to vector<1x40xf32>
    %62 = vector.broadcast %60 : vector<5x1xf32> to vector<5x40xf32>
    %63 = vector.broadcast %61 : vector<1x40xf32> to vector<5x40xf32>
    %64 = arith.mulf %62, %63 : vector<5x40xf32>
    %65 = vector.broadcast %59 : vector<5x1xf32> to vector<5x40xf32>
    %66 = arith.addf %64, %65 : vector<5x40xf32>
    %67 = vector.extract_strided_slice %58 {offsets = [0, 1], sizes = [5, 1], strides = [1, 1]} : vector<5x2xf32> to vector<5x1xf32>
    %68 = vector.extract_strided_slice %57 {offsets = [1, 0], sizes = [1, 40], strides = [1, 1]} : vector<2x40xf32> to vector<1x40xf32>
    %69 = vector.broadcast %67 : vector<5x1xf32> to vector<5x40xf32>
    %70 = vector.broadcast %68 : vector<1x40xf32> to vector<5x40xf32>
    %71 = arith.mulf %69, %70 : vector<5x40xf32>
    %72 = arith.addf %66, %71 : vector<5x40xf32>
    %cst_22 = arith.constant 0.000000e+00 : f32
    %73 = vector.broadcast %cst_22 : f32 to vector<5x40xf32>
    %74 = arith.maximumf %72, %73 : vector<5x40xf32>
    %c64_23 = arith.constant 64 : index
    %c0_24 = arith.constant 0 : index
    %75 = vector.load %arg2[%c64_23, %c0_24] : memref<144x128xf32, #tpu.memory_space<vmem>>, vector<9x5xf32>
    %c64_25 = arith.constant 64 : index
    %c64_26 = arith.constant 64 : index
    %76 = vector.load %arg2[%c64_25, %c64_26] : memref<144x128xf32, #tpu.memory_space<vmem>>, vector<9x1xf32>
    %77 = vector.extract_strided_slice %75 {offsets = [0, 0], sizes = [9, 1], strides = [1, 1]} : vector<9x5xf32> to vector<9x1xf32>
    %78 = vector.extract_strided_slice %74 {offsets = [0, 0], sizes = [1, 40], strides = [1, 1]} : vector<5x40xf32> to vector<1x40xf32>
    %79 = vector.broadcast %77 : vector<9x1xf32> to vector<9x40xf32>
    %80 = vector.broadcast %78 : vector<1x40xf32> to vector<9x40xf32>
    %81 = arith.mulf %79, %80 : vector<9x40xf32>
    %82 = vector.broadcast %76 : vector<9x1xf32> to vector<9x40xf32>
    %83 = arith.addf %81, %82 : vector<9x40xf32>
    %84 = vector.extract_strided_slice %75 {offsets = [0, 1], sizes = [9, 1], strides = [1, 1]} : vector<9x5xf32> to vector<9x1xf32>
    %85 = vector.extract_strided_slice %74 {offsets = [1, 0], sizes = [1, 40], strides = [1, 1]} : vector<5x40xf32> to vector<1x40xf32>
    %86 = vector.broadcast %84 : vector<9x1xf32> to vector<9x40xf32>
    %87 = vector.broadcast %85 : vector<1x40xf32> to vector<9x40xf32>
    %88 = arith.mulf %86, %87 : vector<9x40xf32>
    %89 = arith.addf %83, %88 : vector<9x40xf32>
    %90 = vector.extract_strided_slice %75 {offsets = [0, 2], sizes = [9, 1], strides = [1, 1]} : vector<9x5xf32> to vector<9x1xf32>
    %91 = vector.extract_strided_slice %74 {offsets = [2, 0], sizes = [1, 40], strides = [1, 1]} : vector<5x40xf32> to vector<1x40xf32>
    %92 = vector.broadcast %90 : vector<9x1xf32> to vector<9x40xf32>
    %93 = vector.broadcast %91 : vector<1x40xf32> to vector<9x40xf32>
    %94 = arith.mulf %92, %93 : vector<9x40xf32>
    %95 = arith.addf %89, %94 : vector<9x40xf32>
    %96 = vector.extract_strided_slice %75 {offsets = [0, 3], sizes = [9, 1], strides = [1, 1]} : vector<9x5xf32> to vector<9x1xf32>
    %97 = vector.extract_strided_slice %74 {offsets = [3, 0], sizes = [1, 40], strides = [1, 1]} : vector<5x40xf32> to vector<1x40xf32>
    %98 = vector.broadcast %96 : vector<9x1xf32> to vector<9x40xf32>
    %99 = vector.broadcast %97 : vector<1x40xf32> to vector<9x40xf32>
    %100 = arith.mulf %98, %99 : vector<9x40xf32>
    %101 = arith.addf %95, %100 : vector<9x40xf32>
    %102 = vector.extract_strided_slice %75 {offsets = [0, 4], sizes = [9, 1], strides = [1, 1]} : vector<9x5xf32> to vector<9x1xf32>
    %103 = vector.extract_strided_slice %74 {offsets = [4, 0], sizes = [1, 40], strides = [1, 1]} : vector<5x40xf32> to vector<1x40xf32>
    %104 = vector.broadcast %102 : vector<9x1xf32> to vector<9x40xf32>
    %105 = vector.broadcast %103 : vector<1x40xf32> to vector<9x40xf32>
    %106 = arith.mulf %104, %105 : vector<9x40xf32>
    %107 = arith.addf %101, %106 : vector<9x40xf32>
    %cst_27 = arith.constant 0.000000e+00 : f32
    %108 = vector.broadcast %cst_27 : f32 to vector<9x40xf32>
    %109 = arith.maximumf %107, %108 : vector<9x40xf32>
    %c80 = arith.constant 80 : index
    %c0_28 = arith.constant 0 : index
    %110 = vector.load %arg2[%c80, %c0_28] : memref<144x128xf32, #tpu.memory_space<vmem>>, vector<18x9xf32>
    %c80_29 = arith.constant 80 : index
    %c64_30 = arith.constant 64 : index
    %111 = vector.load %arg2[%c80_29, %c64_30] : memref<144x128xf32, #tpu.memory_space<vmem>>, vector<18x1xf32>
    %cst_31 = arith.constant dense<0.000000e+00> : vector<18x40xf32>
    %112 = tpu.matmul %110, %109, %cst_31 {dimension_numbers = #tpu.dot_dimension_numbers<[1], [0], [0], [1], [0, 0, 1, 1], [], []>} : vector<18x9xf32>, vector<9x40xf32>, vector<18x40xf32> -> vector<18x40xf32>
    %113 = vector.broadcast %111 : vector<18x1xf32> to vector<18x40xf32>
    %114 = arith.addf %112, %113 : vector<18x40xf32>
    %cst_32 = arith.constant 0.000000e+00 : f32
    %115 = vector.broadcast %cst_32 : f32 to vector<18x40xf32>
    %116 = arith.maximumf %114, %115 : vector<18x40xf32>
    %c104 = arith.constant 104 : index
    %c0_33 = arith.constant 0 : index
    %117 = vector.load %arg2[%c104, %c0_33] : memref<144x128xf32, #tpu.memory_space<vmem>>, vector<36x18xf32>
    %c104_34 = arith.constant 104 : index
    %c64_35 = arith.constant 64 : index
    %118 = vector.load %arg2[%c104_34, %c64_35] : memref<144x128xf32, #tpu.memory_space<vmem>>, vector<36x1xf32>
    %cst_36 = arith.constant dense<0.000000e+00> : vector<36x40xf32>
    %119 = tpu.matmul %117, %116, %cst_36 {dimension_numbers = #tpu.dot_dimension_numbers<[1], [0], [0], [1], [0, 0, 1, 1], [], []>} : vector<36x18xf32>, vector<18x40xf32>, vector<36x40xf32> -> vector<36x40xf32>
    %120 = vector.broadcast %118 : vector<36x1xf32> to vector<36x40xf32>
    %121 = arith.addf %119, %120 : vector<36x40xf32>
    %122 = tpu.transpose %121, [1, 0] : vector<36x40xf32> -> vector<40x36xf32>
    %c0_37 = arith.constant 0 : index
    %c0_38 = arith.constant 0 : index
    %123 = vector.load %arg3[%c0_37, %c0_38] : memref<40x36xf32, #tpu.memory_space<vmem>>, vector<40x36xf32>
    tpu.vector_store %arg3[%c0_37, %c0_38], %122 {strides = array<i32>} : memref<40x36xf32, #tpu.memory_space<vmem>>, vector<40x36xf32>,
    return
  }
  func.func @transform_0(%arg0: i32) -> (i32, i32) {
    %c0_i32 = arith.constant 0 : i32
    %c0_i32_0 = arith.constant 0 : i32
    return %arg0, %c0_i32 : i32, i32
  }
  func.func @transform_1(%arg0: i32) -> (i32, i32) {
    %c0_i32 = arith.constant 0 : i32
    %c0_i32_0 = arith.constant 0 : i32
    %c0_i32_1 = arith.constant 0 : i32
    return %c0_i32, %c0_i32_0 : i32, i32
  }
  func.func @transform_2(%arg0: i32) -> (i32, i32) {
    %c0_i32 = arith.constant 0 : i32
    %c0_i32_0 = arith.constant 0 : i32
    return %arg0, %c0_i32 : i32, i32
  }
}

</mosaic_0001>

<bundles_post_ra>
// kernel: tpu_custom_call.1
= control target key start
LH: loop header
LB: loop body
LE: loop exit
PB: predicated region body
PF: predicated region fallthrough
CT: control target
= control target key end

     0   :  { %7 = vsyncpa [#allocation3], 0  ;;  %s1268_s0 = inlined_call_operand.hbm [shape: f32[37,36], index: 0, kind: input, shape index: {}]   ;;  %s1269_s1 = inlined_call_operand.hbm [shape: f32[144,128], index: 1, kind: input, shape index: {}]   ;;  %s1270_s2 = inlined_call_operand.hbm [shape: f32[37,36], index: 2, kind: output, shape index: {}]  }
   0x1   :  { %8 = vsyncpa [#allocation6], 0 }
   0x2   :  { %9 = vsyncpa [#allocation4], 0  ;;  %s1078_s9 = smov [#allocation2]   ;;  %s1006_s13 = scalar_lea.hbm %s1268_s0, 640 }
   0x3   :  { %s15_s10 = sshll.u32 %s1078_s9, 4  ;;  %p1007_p0 = scmp.ne.s32.totalorder %s1268_s0, %s1006_s13  ;;  %s16_s10 = int_to_ptr.vmem [resolvable:$true] %s15_s10 }
   0x4   :  { %p1010_p1 = scmp.lt.u32.totalorder %s1006_s13, %s1268_s0 }
   0x6   :  { %p1012_p2 = pnand %p1010_p1, %p1007_p0 }
   0x8   :  { %1015 = shalt.err (!%p1012_p2)
}
   0x9   :  { %s1016_s18 = scalar_lea.vmem %s16_s10, 640  ;;  %p1021_p4 = scmp.lt.s32.totalorder %s16_s10, %s16_s10 }
   0xa   :  { %p1017_p3 = scmp.ne.s32.totalorder %s16_s10, %s1016_s18  ;;  %p1022_p5 = scmp.lt.s32.totalorder %s1016_s18, %s1016_s18 }
   0xc   :  { %p1023_p6 = por %p1022_p5, %p1021_p4 }
   0xe   :  { %p1024_p7 = pnand %p1023_p6, %p1017_p3 }
  0x10   :  { %1027 = shalt.err (!%p1024_p7)
}
  0x11   :  { %s1079_s19 = smov 128   ;;  %s1080_s20 = smov 8  }
  0x12   :  { %21 = dma.hbm_to_vmem [thread:$0]  %s1268_s0, 640, %s16_s10, [#allocation3], %s1079_s19, %s1079_s19, %s1080_s20  }
  0x13   :  { %s1081_s23 = smov [#allocation5]   ;;  %s1028_s27 = scalar_lea.hbm %s1269_s1, 2304 }
  0x14   :  { %s27_s24 = sshll.u32 %s1081_s23, 4  ;;  %p1029_p8 = scmp.ne.s32.totalorder %s1269_s1, %s1028_s27  ;;  %s28_s24 = int_to_ptr.vmem [resolvable:$true] %s27_s24 }
  0x15   :  { %p1032_p9 = scmp.lt.u32.totalorder %s1028_s27, %s1269_s1 }
  0x17   :  { %p1034_p10 = pnand %p1032_p9, %p1029_p8 }
  0x19   :  { %1037 = shalt.err (!%p1034_p10)
}
  0x1a   :  { %s1038_s4 = scalar_lea.vmem %s28_s24, 2304  ;;  %p1043_p12 = scmp.lt.s32.totalorder %s28_s24, %s28_s24 }
  0x1b   :  { %p1039_p11 = scmp.ne.s32.totalorder %s28_s24, %s1038_s4  ;;  %p1044_p13 = scmp.lt.s32.totalorder %s1038_s4, %s1038_s4 }
  0x1d   :  { %p1045_p0 = por %p1044_p13, %p1043_p12 }
  0x1f   :  { %p1046_p1 = pnand %p1045_p0, %p1039_p11 }
  0x21   :  { %1049 = shalt.err (!%p1046_p1)
}
  0x22   :  { %33 = dma.hbm_to_vmem [thread:$0]  %s1269_s1, 2304, %s28_s24, [#allocation6], %s1079_s19, %s1079_s19, %s1080_s20  }
  0x23   :  { %1072 = dma.done.wait [#allocation3], 640  }
  0x24   :  { %1073 = vsyncadd [#allocation3], 4294966656 }
  0x25   :  { %1074 = dma.done.wait [#allocation6], 2304  }
  0x26   :  { %1075 = vsyncadd [#allocation6], 4294964992  ;;  %v1082_v0 = vmov 0.0|0.0   ;;  %vm1083_vm0 = vmmov 0   ;;  %v1084_v1 = vmov 0.0   ;;  %v1085_v2 = vmov 64  }
  0x27   :  { %947 = vmatprep.subr.bf16.mxu0 %v1082_v0  ;;  %888 = vmatprep.mubr.msk.f32.mxu0 %vm1083_vm0, %v1084_v1  ;;  %vm63_vm1 = vcmask 293888   ;;  %v40_v3 = vld [vmem:[#allocation2] sm:$0xff]  ;;  %v41_v4 = vld [vmem:[#allocation2 + $0x8] sm:$0xff]  ;;  %v47_v8 = vld [vmem:[#allocation5 + $0x10] sm:$0x3]  ;;  %vm180_vm3 = vcmask 146432  }
  0x28   :  { %985 = vset.pattern.permute.xlu0 %v1085_v2  ;;  %986 = vset.pattern.permute.xlu1 %v1085_v2  ;;  %vm1148_vm2 = vmpackc.low %vm63_vm1, %vm63_vm1  ;;  %v948_v6 = vpack.c.bf16 %v41_v4, %v40_v3  ;;  %v45_v7 = vld [vmem:[#allocation5] sm:$0xff]  ;;  %v42_v9 = vld [vmem:[#allocation2 + $0x10] sm:$0xff]  ;;  %vm185_vm4 = vcmask 1041408   ;;  %v1086_v34 = vmov 1   ;;  %v1087_v35 = vmov 2   ;;  %s1092_s1 = smov [#allocation7]  }
  0x29   :  { %959 = vmatprep.subr.bf16.mxu1 %v1082_v0  ;;  %910 = vmatprep.mubr.msk.f32.mxu1 %vm1083_vm0, %v1084_v1  ;;  %v43_v10 = vld [vmem:[#allocation2 + $0x18] sm:$0xff]  ;;  %v168_v11 = vld [vmem:[#allocation5 + $0x18] sm:$0xff]  ;;  %v46_v12 = vld [vmem:[#allocation5 + $0x8] sm:$0xff]  ;;  %v1088_v36 = vmov 3   ;;  %v1089_v37 = vmov 0   ;;  %v1090_v39 = vmov 4   ;;  %v356_v4 = vlaneseq }
  0x2a   :  { %50 = vperm.xlu0 %985, %v45_v7   ;;  %950 = vmatpush3.bf16.xpose.msk.msra.mxu0 %vm1148_vm2, %v948_v6  ;;  %v952_v13 = vpack.c.bf16 %v43_v10, %v42_v9  ;;  %v169_v14 = vld [vmem:[#allocation5 + $0x20] sm:$0x1]  ;;  %v1155_v15 = vld [vmem:[#allocation5 + $0x28] sm:$0x1f]  ;;  %v350_v16 = vld [vmem:[#allocation5 + $0x30] sm:$0x3] }
  0x2b   :  { %60 = vperm.xlu1 %986, %v47_v8   ;;  %951 = vmatprep.subr.bf16.mxu0 %v1082_v0  ;;  %v44_v17 = vld [vmem:[#allocation2 + $0x20] sm:$0xff]  ;;  %v434_v40 = vld [vmem:[#allocation5 + $0x40] sm:$0xff]  ;;  %v435_v41 = vld [vmem:[#allocation5 + $0x48] sm:$0x1]  ;;  %vm275_vm5 = vcmask 1040384   ;;  %vm1091_vm6 = vmmov 1  }
  0x2c   :  { %v407_v38 = vld [vmem:[#allocation5 + $0x38] sm:$0x1f]  ;;  %vm1178_vm7 = vmpackc.low %vm275_vm5, %vm1091_vm6  ;;  %vm272_vm8 = vcmask 72704   ;;  %v1189_v52 = vld [vmem:[#allocation5 + $0x50] sm:$0xff]  ;;  %v357_v6 = vshrl.u32 %v356_v4, 7  ;;  %s813_s6 = sshll.u32 %s1092_s1, 4  ;;  %s814_s6 = int_to_ptr.vmem [resolvable:$true] %s813_s6 }
  0x2d   :  { %v1192_v53 = vld [vmem:[#allocation5 + $0x58] sm:$0xff]  ;;  %v1195_v54 = vld [vmem:[#allocation5 + $0x60] sm:$0x3]  ;;  %v1198_v55 = vld [vmem:[#allocation5 + $0x68] sm:$0xff]  ;;  %s1050_s7 = scalar_lea.vmem %s814_s6, 640  ;;  %p1055_p3 = scmp.lt.s32.totalorder %s814_s6, %s814_s6 }
  0x2e   :  { %55 = vperm.xlu0 %985, %v46_v12   ;;  %v1201_v56 = vld [vmem:[#allocation5 + $0x78] sm:$0xff]  ;;  %v1203_v57 = vld [vmem:[#allocation5 + $0x70] sm:$0xff]  ;;  %v1206_v58 = vld [vmem:[#allocation5 + $0x88] sm:$0xf]  ;;  %p1051_p2 = scmp.ne.s32.totalorder %s814_s6, %s1050_s7  ;;  %p1056_p4 = scmp.lt.s32.totalorder %s1050_s7, %s1050_s7 }
  0x2f   :  { %172 = vperm.xlu1 %986, %v168_v11   ;;  %v1209_v59 = vld [vmem:[#allocation5 + $0x80] sm:$0xff] }
  0x30   :  { %p1057_p5 = por %p1056_p4, %p1055_p3 }
  0x32   :  { %177 = vperm.xlu0 %985, %v169_v14   ;;  %954 = vmatpush3.bf16.xpose.msk.msra.mxu0 %vm1148_vm2, %v952_v13  ;;  %p1058_p6 = pnand %p1057_p5, %p1051_p2 }
  0x33   :  { %269 = vperm.xlu1 %986, %v1155_v15   ;;  %886 = vmatprep.subr.mxu0 %v1084_v1 }
  0x36   :  { %988 = vset.pattern.permute.xlu0 %v1087_v35 }
  0x37   :  { %362 = vperm.xlu1 %986, %v350_v16   ;;  %377 = vperm.xlu0 %988, %v350_v16  }
  0x3a   :  { %887 = vmatpush3.xpose.msk.msra.mxu0 %vm63_vm1, %v44_v17  ;;  %v392_v17 = vsub.s32 3, %v357_v6 }
  0x3b   :  { %987 = vset.pattern.permute.xlu1 %v1086_v34  ;;  %989 = vset.pattern.permute.xlu0 %v1089_v37 }
  0x3c   :  { %367 = vperm.xlu1 %987, %v350_v16   ;;  %353 = vperm.xlu0 %989, %v350_v16  }
  0x3d   :  { %889 = vmatmul.mubr.msk.f32.vlgmr.msra.gmra.mrb[0].mxu0 %vm63_vm1, %v45_v7 }
  0x3e   :  { %891 = vmatprep.mubr.msk.f32.mxu0 %vm1083_vm0, %v1084_v1 }
  0x40   :  { %990 = vset.pattern.permute.xlu1 %v1088_v36  ;;  %410 = vperm.xlu0 %989, %v407_v38  }
  0x41   :  { %892 = vmatmul.mubr.msk.f32.gmra.mrb[2].mxu0 %vm63_vm1, %v46_v12  ;;  %387 = vperm.xlu1 %990, %v350_v16   ;;  %v372_v12 = vsub.s32 1, %v357_v6 }
  0x42   :  { %894 = vmatprep.mubr.msk.f32.mxu0 %vm1083_vm0, %v1084_v1 }
  0x44   :  { %438 = vperm.xlu0 %989, %v434_v40  }
  0x45   :  { %895 = vmatmul.mubr.msk.f32.gmra.mrb[4].mxu0 %vm63_vm1, %v47_v8  ;;  %991 = vset.pattern.permute.xlu1 %v1090_v39 }
  0x46   :  { %903 = vmatprep.mubr.msk.f32.mxu0 %vm180_vm3, %v168_v11  ;;  %397 = vperm.xlu1 %991, %v350_v16   ;;  %v358_v11 = vsub.s32 0, %v357_v6 }
  0x48   :  { %995 = vset.pattern.permute.xlu0 %v1085_v2 }
  0x49   :  { %453 = vperm.xlu0 %995, %v434_v40  }
  0x4a   :  { %992 = vset.pattern.permute.xlu1 %v1085_v2 }
  0x4b   :  { %419 = vperm.xlu1 %992, %v407_v38  }
  0x4d   :  { %998 = vset.pattern.permute.xlu0 %v1086_v34 }
  0x4e   :  { %467 = vperm.xlu0 %998, %v435_v41  }
  0x4f   :  { %993 = vset.pattern.permute.xlu1 %v1086_v34 }
  0x50   :  { %424 = vperm.xlu1 %993, %v407_v38  }
  0x52   :  { %1000 = vset.pattern.permute.xlu0 %v1088_v36 }
  0x53   :  { %495 = vperm.xlu0 %1000, %v434_v40  }
  0x54   :  { %994 = vset.pattern.permute.xlu1 %v1089_v37 }
  0x55   :  { %443 = vperm.xlu1 %994, %v435_v41  }
  0x57   :  { %1003 = vset.pattern.permute.xlu0 %v1090_v39 }
  0x58   :  { %515 = vperm.xlu0 %1003, %v435_v41  }
  0x59   :  { %996 = vset.pattern.permute.xlu1 %v1085_v2 }
  0x5a   :  { %457 = vperm.xlu1 %996, %v435_v41  }
  0x5c   :  { %1005 = vset.pattern.permute.xlu0 %v1085_v2 }
  0x5d   :  { %543 = vperm.xlu0 %1005, %v1195_v54  }
  0x5e   :  { %997 = vset.pattern.permute.xlu1 %v1086_v34 }
  0x5f   :  { %463 = vperm.xlu1 %997, %v434_v40  }
  0x61   :  { %655 = vperm.xlu0 %1005, %v1201_v56  }
  0x63   :  { %999 = vset.pattern.permute.xlu1 %v1087_v35 }
  0x64   :  { %479 = vperm.xlu1 %999, %v434_v40  }
  0x65   :  { %665 = vperm.xlu0 %1005, %v1206_v58  }
  0x68   :  { %483 = vperm.xlu1 %999, %v435_v41  }
  0x6c   :  { %1001 = vset.pattern.permute.xlu1 %v1088_v36 }
  0x6d   :  { %499 = vperm.xlu1 %1001, %v435_v41  }
  0x71   :  { %1002 = vset.pattern.permute.xlu1 %v1090_v39 }
  0x72   :  { %511 = vperm.xlu1 %1002, %v434_v40  }
  0x76   :  { %1004 = vset.pattern.permute.xlu1 %v1085_v2 }
  0x77   :  { %533 = vperm.xlu1 %1004, %v1189_v52  }
  0x7b   :  { %538 = vperm.xlu1 %1004, %v1192_v53  }
  0x7f   :  { %645 = vperm.xlu1 %1004, %v1198_v55  }
  0x83   :  { %650 = vperm.xlu1 %1004, %v1203_v57  }
  0x87   :  { %660 = vperm.xlu1 %1004, %v1209_v59  }
  0xa9   :  { %v51_v18 = vpop.permute.xlu0 %50 }
  0xaa   :  { %v61_v28 = vpop.permute.xlu1 %60 }
  0xad   :  { %v56_v22 = vpop.permute.xlu0 %55 }
  0xae   :  { %v173_v44 = vpop.permute.xlu1 %172 }
  0xb1   :  { %v178_v42 = vpop.permute.xlu0 %177 }
  0xb2   :  { %v270_v60 = vpop.permute.xlu1 %269 }
  0xb6   :  { %v363_v61 = vpop.permute.xlu1 %362  ;;  %v378_v7 = vpop.permute.xlu0 %377 }
  0xbb   :  { %v368_v62 = vpop.permute.xlu1 %367  ;;  %v354_v16 = vpop.permute.xlu0 %353 }
  0xc0   :  { %v388_v63 = vpop.permute.xlu1 %387 }
  0xc5   :  { %v398_v2 = vpop.permute.xlu1 %397 }
  0xca   :  { %v420_v3 = vpop.permute.xlu1 %419 }
  0xcf   :  { %v425_v5 = vpop.permute.xlu1 %424 }
  0xd4   :  { %v444_v13 = vpop.permute.xlu1 %443 }
 0x110   :  { %v151_v19 = vpop.f32.mrb[0].mxu0 }
 0x111   :  { %v890_v20 = vpop.f32.mrb[1].mxu0  ;;  %v152_v21 = vadd.f32 %v151_v19, %v51_v18 }
 0x112   :  { %v402_v20 = vsub.s32 4, %v357_v6 }
 0x113   :  { %v165_v26 = vmax.f32 %v152_v21, 0.0 }
 0x114   :  { %v156_v23 = vpop.f32.mrb[2].mxu0 }
 0x115   :  { %v157_v24 = vadd.f32 %v156_v23, %v56_v22  ;;  %v893_v25 = vpop.f32.mrb[3].mxu0  ;;  %v458_v23 = vpop.permute.xlu1 %457 }
 0x117   :  { %v166_v27 = vmax.f32 %v157_v24, 0.0 }
 0x118   :  { %v161_v29 = vpop.f32.mrb[4].mxu0 }
 0x119   :  { %v955_v30 = vpack.c.bf16 %v166_v27, %v165_v26  ;;  %v162_v31 = vadd.f32 %v161_v29, %v61_v28  ;;  %v896_v32 = vpop.f32.mrb[5].mxu0  ;;  %v411_v27 = vpop.permute.xlu0 %410 }
 0x11b   :  { %v167_v33 = vmax.f32 %v162_v31, 0.0  ;;  %956 = vmatprep.subr.bf16.mxu0 %v955_v30 }
 0x11c   :  { %958 = vmatpush3.bf16.msra.mxu0 %v955_v30 }
 0x11d   :  { %901 = vmatprep.subr.msk.mxu0 %vm185_vm4, %v167_v33  ;;  %v439_v36 = vpop.permute.xlu0 %438 }
 0x120   :  { %902 = vmatpush3.msk.msra.mxu0 %vm185_vm4, %v167_v33  ;;  %v464_v33 = vpop.permute.xlu1 %463 }
 0x121   :  { %904 = vmatmul.mubr.msk.f32.vlgmr.msra.gmra.mrb[6].mxu0 %vm180_vm3, %v169_v14  ;;  %v454_v40 = vpop.permute.xlu0 %453 }
 0x124   :  { %v480_v39 = vpop.permute.xlu1 %479 }
 0x1f4   :  { %v905_v43 = vpop.f32.mrb[6].mxu0 }
 0x1f5   :  { %v261_v45 = vadd.f32 %v905_v43, %v178_v42  ;;  %v255_v46 = vpop.f32.mrb[7].mxu0 }
 0x1f6   :  { %v256_v47 = vadd.f32 %v255_v46, %v173_v44  ;;  %v484_v46 = vpop.permute.xlu1 %483 }
 0x1f7   :  { %v265_v48 = vmax.f32 %v261_v45, 0.0 }
 0x1f8   :  { %v264_v49 = vmax.f32 %v256_v47, 0.0  ;;  %v468_v47 = vpop.permute.xlu0 %467 }
 0x1fa   :  { %v960_v51 = vpack.c.bf16 %v265_v48, %v264_v49 }
 0x1fc   :  { %962 = vmatpush3.bf16.msk.msra.mxu1 %vm1178_vm7, %v960_v51 }
 0x1fd   :  { %963 = vmatprep.subr.bf16.mxu1 %v1082_v0 }
 0x1ff   :  { %911 = vmatmul.mubr.msk.f32.vlgmr.msra.gmra.mrb[0].mxu1 %vm272_vm8, %v1155_v15  ;;  %v382_v15 = vsub.s32 2, %v357_v6 }
 0x200   :  { %917 = vmatprep.mubr.msk.f32.mxu1 %vm1083_vm0, %v1084_v1 }
 0x2d2   :  { %v345_v8 = vpop.f32.mrb[0].mxu1 }
 0x2d3   :  { %v346_v9 = vadd.f32 %v345_v8, %v270_v60  ;;  %v912_v10 = vpop.f32.mrb[1].mxu1 }
 0x2d5   :  { %v349_v14 = vmax.f32 %v346_v9, 0.0 }
 0x2d7   :  { %v359_v18 = vrot.slane %v349_v14, %v358_v11  ;;  %v373_v19 = vrot.slane %v349_v14, %v372_v12  ;;  %v383_v22 = vrot.slane %v349_v14, %v382_v15  ;;  %v393_v26 = vrot.slane %v349_v14, %v392_v17 }
 0x2d8   :  { %v403_v30 = vrot.slane %v349_v14, %v402_v20 }
 0x2d9   :  { %v360_v21 = vmul.f32 %v359_v18, %v354_v16  ;;  %v374_v25 = vmul.f32 %v373_v19, %v368_v62  ;;  %v384_v29 = vmul.f32 %v383_v22, %v378_v7  ;;  %v394_v32 = vmul.f32 %v393_v26, %v388_v63  ;;  %v496_v62 = vpop.permute.xlu0 %495 }
 0x2da   :  { %v404_v35 = vmul.f32 %v403_v30, %v398_v2 }
 0x2db   :  { %v365_v24 = vadd.f32 %v363_v61, %v360_v21  ;;  %v500_v61 = vpop.permute.xlu1 %499 }
 0x2dd   :  { %v375_v28 = vadd.f32 %v374_v25, %v365_v24  ;;  %v516_v21 = vpop.permute.xlu0 %515 }
 0x2df   :  { %v385_v31 = vadd.f32 %v384_v29, %v375_v28  ;;  %v512_v19 = vpop.permute.xlu1 %511 }
 0x2e1   :  { %v395_v34 = vadd.f32 %v394_v32, %v385_v31 }
 0x2e3   :  { %v405_v37 = vadd.f32 %v404_v35, %v395_v34  ;;  %v534_v50 = vpop.permute.xlu1 %533 }
 0x2e5   :  { %v406_v38 = vmax.f32 %v405_v37, 0.0 }
 0x2e7   :  { %v416_v41 = vrot.slane %v406_v38, %v358_v11  ;;  %v430_v42 = vrot.slane %v406_v38, %v372_v12 }
 0x2e9   :  { %v417_v43 = vmul.f32 %v416_v41, %v411_v27  ;;  %v431_v45 = vmul.f32 %v430_v42, %v425_v5 }
 0x2eb   :  { %v422_v44 = vadd.f32 %v420_v3, %v417_v43 }
 0x2ed   :  { %v432_v48 = vadd.f32 %v431_v45, %v422_v44 }
 0x2ef   :  { %v433_v49 = vmax.f32 %v432_v48, 0.0 }
 0x2f1   :  { %v449_v51 = vrot.slane %v433_v49, %v358_v11  ;;  %v473_v60 = vrot.slane %v433_v49, %v372_v12  ;;  %v489_v4 = vrot.slane %v433_v49, %v382_v15  ;;  %v505_v6 = vrot.slane %v433_v49, %v392_v17 }
 0x2f2   :  { %v521_v14 = vrot.slane %v433_v49, %v402_v20 }
 0x2f3   :  { %v450_v63 = vmul.f32 %v449_v51, %v439_v36  ;;  %v451_v2 = vmul.f32 %v449_v51, %v444_v13  ;;  %v474_v8 = vmul.f32 %v473_v60, %v464_v33  ;;  %v475_v10 = vmul.f32 %v473_v60, %v468_v47 }
 0x2f4   :  { %v490_v16 = vmul.f32 %v489_v4, %v480_v39  ;;  %v491_v5 = vmul.f32 %v489_v4, %v484_v46  ;;  %v507_v11 = vmul.f32 %v505_v6, %v500_v61  ;;  %v506_v24 = vmul.f32 %v505_v6, %v496_v62 }
 0x2f5   :  { %v461_v7 = vadd.f32 %v458_v23, %v451_v2  ;;  %v460_v9 = vadd.f32 %v454_v40, %v450_v63  ;;  %v522_v13 = vmul.f32 %v521_v14, %v512_v19  ;;  %v523_v15 = vmul.f32 %v521_v14, %v516_v21 }
 0x2f7   :  { %v476_v3 = vadd.f32 %v474_v8, %v460_v9  ;;  %v477_v18 = vadd.f32 %v475_v10, %v461_v7 }
 0x2f9   :  { %v493_v22 = vadd.f32 %v491_v5, %v477_v18  ;;  %v492_v12 = vadd.f32 %v490_v16, %v476_v3 }
 0x2fb   :  { %v509_v25 = vadd.f32 %v507_v11, %v493_v22  ;;  %v508_v26 = vadd.f32 %v506_v24, %v492_v12 }
 0x2fd   :  { %v524_v17 = vadd.f32 %v522_v13, %v508_v26  ;;  %v525_v23 = vadd.f32 %v523_v15, %v509_v25 }
 0x2ff   :  { %v526_v27 = vmax.f32 %v524_v17, 0.0  ;;  %v527_v28 = vmax.f32 %v525_v23, 0.0 }
 0x301   :  { %v964_v29 = vpack.c.bf16 %v527_v28, %v526_v27 }
 0x303   :  { %966 = vmatpush3.bf16.msk.msra.mxu1 %vm1178_vm7, %v964_v29 }
 0x304   :  { %967 = vmatprep.subr.bf16.mxu1 %v1082_v0 }
 0x306   :  { %918 = vmatmul.mubr.msk.f32.vlgmr.msra.gmra.mrb[2].mxu1 %vm272_vm8, %v1189_v52  ;;  %v539_v52 = vpop.permute.xlu1 %538 }
 0x307   :  { %920 = vmatprep.mubr.msk.f32.mxu1 %vm1083_vm0, %v1084_v1 }
 0x30a   :  { %921 = vmatmul.mubr.msk.f32.gmra.mrb[4].mxu1 %vm272_vm8, %v1192_v53  ;;  %v544_v53 = vpop.permute.xlu0 %543 }
 0x30b   :  { %923 = vmatprep.mubr.msk.f32.mxu1 %vm1083_vm0, %v1084_v1 }
 0x30e   :  { %924 = vmatmul.mubr.msk.f32.gmra.mrb[6].mxu1 %vm272_vm8, %v1195_v54  ;;  %v646_v54 = vpop.permute.xlu1 %645  ;;  %v656_v45 = vpop.permute.xlu0 %655 }
 0x30f   :  { %932 = vmatprep.mubr.msk.f32.mxu1 %vm1083_vm0, %v1084_v1 }
 0x312   :  { %v651_v42 = vpop.permute.xlu1 %650 }
 0x316   :  { %v661_v48 = vpop.permute.xlu1 %660 }
 0x3d9   :  { %v621_v0 = vpop.f32.mrb[2].mxu1 }
 0x3da   :  { %v919_v20 = vpop.f32.mrb[3].mxu1  ;;  %v622_v30 = vadd.f32 %v621_v0, %v534_v50 }
 0x3dc   :  { %v635_v34 = vmax.f32 %v622_v30, 0.0 }
 0x3dd   :  { %v626_v31 = vpop.f32.mrb[4].mxu1 }
 0x3de   :  { %v627_v32 = vadd.f32 %v626_v31, %v539_v52  ;;  %v922_v33 = vpop.f32.mrb[5].mxu1 }
 0x3e0   :  { %v636_v35 = vmax.f32 %v627_v32, 0.0 }
 0x3e1   :  { %v631_v36 = vpop.f32.mrb[6].mxu1 }
 0x3e2   :  { %v968_v37 = vpack.c.bf16 %v636_v35, %v635_v34  ;;  %v632_v38 = vadd.f32 %v631_v36, %v544_v53  ;;  %v925_v39 = vpop.f32.mrb[7].mxu1 }
 0x3e4   :  { %v637_v40 = vmax.f32 %v632_v38, 0.0  ;;  %969 = vmatpush3.bf16.msra.mxu1 %v968_v37 }
 0x3e5   :  { %930 = vmatprep.subr.mxu1 %v1084_v1 }
 0x3e8   :  { %931 = vmatpush3.msk.msra.mxu1 %vm185_vm4, %v637_v40 }
 0x3e9   :  { %933 = vmatmul.mubr.msk.f32.vlgmr.msra.gmra.mrb[8].mxu1 %vm180_vm3, %v1198_v55 }
 0x3ea   :  { %935 = vmatprep.mubr.msk.f32.mxu1 %vm1083_vm0, %v1084_v1 }
 0x3ed   :  { %936 = vmatmul.mubr.msk.f32.gmra.mrb[10].mxu1 %vm180_vm3, %v1203_v57 }
 0x3ee   :  { %938 = vmatprep.mubr.msk.f32.mxu1 %vm1083_vm0, %v1084_v1 }
 0x3f1   :  { %939 = vmatmul.mubr.msk.f32.gmra.mrb[12].mxu1 %vm180_vm3, %v1201_v56 }
 0x3f2   :  { %941 = vmatprep.mubr.msk.f32.mxu1 %vm1083_vm0, %v1084_v1 }
 0x3f5   :  { %942 = vmatmul.mubr.msk.f32.gmra.mrb[14].mxu1 %vm180_vm3, %v1209_v59 }
 0x3f6   :  { %944 = vmatprep.mubr.msk.f32.mxu1 %vm1083_vm0, %v1084_v1 }
 0x3f9   :  { %945 = vmatmul.mubr.msk.f32.gmra.mrb[16].mxu1 %vm180_vm3, %v1206_v58  ;;  %v666_v58 = vpop.permute.xlu0 %665 }
 0x4bc   :  { %v747_v55 = vpop.f32.mrb[8].mxu1 }
 0x4bd   :  { %v748_v57 = vadd.f32 %v747_v55, %v646_v54  ;;  %v934_v41 = vpop.f32.mrb[9].mxu1 }
 0x4bf   :  { %771 = vxpose.xlu1.b32.start [1/5] (short) (narrow) %v748_v57, 40 }
 0x4c0   :  { %v752_v43 = vpop.f32.mrb[10].mxu1 }
 0x4c1   :  { %v753_v56 = vadd.f32 %v752_v43, %v651_v42  ;;  %v937_v44 = vpop.f32.mrb[11].mxu1 }
 0x4c3   :  { %772 = vxpose.xlu1.b32.cont [2/5] (short) (narrow) %v753_v56, 40 }
 0x4c4   :  { %v757_v46 = vpop.f32.mrb[12].mxu1 }
 0x4c5   :  { %v758_v47 = vadd.f32 %v757_v46, %v656_v45  ;;  %v940_v59 = vpop.f32.mrb[13].mxu1 }
 0x4c7   :  { %773 = vxpose.xlu1.b32.cont [3/5] (short) (narrow) %v758_v47, 40 }
 0x4c8   :  { %v762_v1 = vpop.f32.mrb[14].mxu1 }
 0x4c9   :  { %v763_v49 = vadd.f32 %v762_v1, %v661_v48  ;;  %v943_v51 = vpop.f32.mrb[15].mxu1 }
 0x4cb   :  { %774 = vxpose.xlu1.b32.cont [4/5] (short) (narrow) %v763_v49, 40 }
 0x4cc   :  { %v767_v60 = vpop.f32.mrb[16].mxu1 }
 0x4cd   :  { %v768_v61 = vadd.f32 %v767_v60, %v666_v58  ;;  %v946_v62 = vpop.f32.mrb[17].mxu1 }
 0x4cf   :  { %775 = vxpose.xlu1.b32.end [5/5] (short) (narrow) %v768_v61, 40 }
 0x53f   :  { %v787_v63 = vpop.trf.xlu1 }
 0x540   :  { %803 = vst.msk [vmem:[#allocation7] sm:$0xff] %vm63_vm1, %v787_v63 }
 0x543   :  { %v788_v2 = vpop.trf.xlu1 }
 0x544   :  { %804 = vst.msk [vmem:[#allocation7 + $0x8] sm:$0xff] %vm63_vm1, %v788_v2 }
 0x547   :  { %v789_v4 = vpop.trf.xlu1 }
 0x548   :  { %805 = vst.msk [vmem:[#allocation7 + $0x10] sm:$0xff] %vm63_vm1, %v789_v4 }
 0x54b   :  { %v790_v6 = vpop.trf.xlu1 }
 0x54c   :  { %806 = vst.msk [vmem:[#allocation7 + $0x18] sm:$0xff] %vm63_vm1, %v790_v6 }
 0x54f   :  { %v791_v7 = vpop.trf.xlu1 }
 0x550   :  { %807 = vst.msk [vmem:[#allocation7 + $0x20] sm:$0xff] %vm63_vm1, %v791_v7 }
 0x551   :  { %1061 = shalt.err (!%p1058_p6)
}
 0x552   :  { %s1062_s10 = scalar_lea.hbm %s1270_s2, 640 }
 0x553   :  { %p1063_p7 = scmp.ne.s32.totalorder %s1270_s2, %s1062_s10  ;;  %p1066_p8 = scmp.lt.u32.totalorder %s1062_s10, %s1270_s2 }
 0x555   :  { %p1068_p9 = pnand %p1066_p8, %p1063_p7 }
 0x557   :  { %1071 = shalt.err (!%p1068_p9)
}
 0x558   :  { %819 = dma.vmem_to_hbm [thread:$0]  %s814_s6, 640, %s1270_s2, [#allocation4], %s1079_s19, %s1079_s19, %s1080_s20  }
 0x559   :  { %1076 = dma.done.wait [#allocation4], 640  }
 0x55a   :  { %1077 = vsyncadd [#allocation4], 4294966656 }
 0x55b   :  { %823 = vsyncpa [#allocation3], 1 }
 0x55c   :  { %824 = vsyncpa [#allocation6], 1 }
 0x55d   :  { %825 = vsyncpa [#allocation4], 1 }

</bundles_post_ra>
